<compile_context>
chip_gen: v7x
topology: tpu7x:2x2x1
jax: 0.10.0
libtpu: 0.0.40
codegen_flags: <defaults>
</compile_context>

<pallas_src>
import math
from functools import partial

import jax
import jax.numpy as jnp
from jax.experimental import pallas as pl
from jax.experimental.pallas import tpu as pltpu

# ----------------------- configuration -----------------------
B = 2                 # batch
NUM_PATCHES = 8       # args.num_patches
SEQ_LEN = 3           # args.sequence_length
H = W = 16            # mask spatial size
FEAT_DIM = 64         # stand-in for resnet50's 2048-d feature
HIDDEN = 32           # stand-in for hidden_dim = 1024
BN_EPS = 1e-5


# ----------------------- fused Pallas kernel -----------------------
def _fused_head_kernel(x_ref, bbox_ref, pad_ref,
                       w_bb_ref, b_bb_ref,
                       w_attn_ref, b_attn_ref, attn_sc_ref, attn_sh_ref,
                       w_fc1h_ref, w_fc1b_ref, b_fc1_ref, fc1_sc_ref, fc1_sh_ref,
                       w_fc2_ref, b_fc2_ref,
                       scores_ref,
                       xattn_ref,
                       *, batch, num_patches, feat_dim, inv_sqrt_n):
    f32 = jnp.float32
    bf16 = jnp.bfloat16
    Bv, N, D = batch, num_patches, feat_dim
    n_obj = Bv * N

    # "backbone": ONE batched dense projection for all B*(N+2) mask images.
    # x_ref rows: [objects (B*N, b-major) | scene (B) | target (B) | zero pad]
    feats = jnp.dot(x_ref[...], w_bb_ref[...],
                    preferred_element_type=f32) + b_bb_ref[...]        # (M_pad, D)

    obj = feats[0:n_obj].reshape(Bv, N, D)                  # (B, N, D) tile-aligned slice
    scene_f = feats[n_obj:n_obj + Bv]                       # (B, D)
    target_f = feats[n_obj + Bv:n_obj + 2 * Bv]             # (B, D)

    # patch attention + softmax over the patch axis (dim=1), fully vectorized
    attn_w = obj * target_f[:, None, :] * inv_sqrt_n        # (B, N, D)
    m = jnp.max(attn_w, axis=1, keepdims=True)
    e = jnp.exp(attn_w - m)
    denom = jnp.sum(e, axis=1, keepdims=True)
    soft_scene = (e / denom) * scene_f[:, None, :]          # exact softmax * scene
    diff = obj - soft_scene                                  # (B, N, D)

    # pack (obj - softmax*scene) into a (B, N*D) scratch via static lane slices
    for n in range(N):
        xattn_ref[:, n * D:(n + 1) * D] = diff[:, n, :]

    # attn MLP: one K = N*D matmul against the un-blocked weight, then BN + ReLU
    attn_pre = jnp.dot(xattn_ref[...].astype(bf16), w_attn_ref[...],
                       preferred_element_type=f32) + b_attn_ref[...]   # (B, N*HIDDEN)
    attn_out = jnp.maximum(attn_pre * attn_sc_ref[...] + attn_sh_ref[...], 0.0)

    # fc head: Linear(N*(HIDDEN+4) -> HIDDEN) with the per-patch [hidden | bbox]
    # interleave pre-split into two matmuls, then BN + ReLU, then Linear(HIDDEN -> N)
    h_pre = (jnp.dot(attn_out.astype(bf16), w_fc1h_ref[...], preferred_element_type=f32)
             + jnp.dot(bbox_ref[...].astype(bf16), w_fc1b_ref[...], preferred_element_type=f32)
             + b_fc1_ref[...])
    h = jnp.maximum(h_pre * fc1_sc_ref[...] + fc1_sh_ref[...], 0.0)    # (B, HIDDEN)

    scores = jnp.dot(h.astype(bf16), w_fc2_ref[...],
                     preferred_element_type=f32) + b_fc2_ref[...]       # (B, N)

    # masked_fill(padding, -1e-6): single compare/where against the precomputed flags
    scores_ref[...] = jnp.where(pad_ref[...] > 0.5, jnp.float32(-1e-6), scores)


# ----------------------- one-time weight packing (outside jit) -----------------------
def pack_params(params):
    hw = H * W
    p = {}
    # Fold the x3 channel repeat into the backbone weight (exact).
    w_bb = params["w_backbone"]
    p["w_bb"] = (w_bb[:hw] + w_bb[hw:2 * hw] + w_bb[2 * hw:]).astype(jnp.bfloat16)   # (HW, D)
    p["b_bb"] = params["b_backbone"].reshape(1, FEAT_DIM).astype(jnp.float32)
    # attn Linear kept as a single un-blocked (N*D, N*HIDDEN) bf16 weight.
    p["w_attn"] = params["w_attn"].astype(jnp.bfloat16)
    p["b_attn"] = params["b_attn"].reshape(1, -1).astype(jnp.float32)
    p["attn_sc"] = params["attn_bn_scale"].reshape(1, -1).astype(jnp.float32)
    p["attn_sh"] = params["attn_bn_shift"].reshape(1, -1).astype(jnp.float32)
    # Split fc1 so the per-patch [hidden | bbox] interleave becomes two matmuls.
    w_fc1 = params["w_fc1"].reshape(NUM_PATCHES, HIDDEN + 4, HIDDEN)
    p["w_fc1h"] = w_fc1[:, :HIDDEN, :].reshape(NUM_PATCHES * HIDDEN, HIDDEN).astype(jnp.bfloat16)
    p["w_fc1b"] = w_fc1[:, HIDDEN:, :].reshape(NUM_PATCHES * 4, HIDDEN).astype(jnp.bfloat16)
    p["b_fc1"] = params["b_fc1"].reshape(1, HIDDEN).astype(jnp.float32)
    p["fc1_sc"] = params["fc1_bn_scale"].reshape(1, HIDDEN).astype(jnp.float32)
    p["fc1_sh"] = params["fc1_bn_shift"].reshape(1, HIDDEN).astype(jnp.float32)
    p["w_fc2"] = params["w_fc2"].astype(jnp.bfloat16)
    p["b_fc2"] = params["b_fc2"].reshape(1, NUM_PATCHES).astype(jnp.float32)
    return p


# ----------------------- forward wrapper -----------------------
@jax.jit
def obstacle_head_forward(packed, scene_mask, target_mask, object_masks, bboxes):
    Bv, Nv, _, Hv, Wv = object_masks.shape
    HWv = Hv * Wv
    Dv = packed["w_bb"].shape[1]
    hidden = packed["w_fc1h"].shape[1]
    nh = packed["w_attn"].shape[1]

    # Pack all B*(N+2) mask images into ONE bf16 LHS (objects first, tile-aligned).
    obj_flat = object_masks.reshape(Bv * Nv, HWv)
    scene_flat = scene_mask.reshape(Bv, HWv)
    target_flat = target_mask.reshape(Bv, HWv)
    x_packed = jnp.concatenate([obj_flat, scene_flat, target_flat], axis=0).astype(jnp.bfloat16)
    m_total = Bv * (Nv + 2)
    m_pad = ((m_total + 15) // 16) * 16                     # bf16 sublane-pack multiple
    if m_pad > m_total:
        x_packed = jnp.pad(x_packed, ((0, m_pad - m_total), (0, 0)))

    bbox_flat = bboxes.reshape(Bv, Nv * 4).astype(jnp.float32)
    # padding patch <=> its object mask is all zeros (computed once, exact in f32)
    pad_mask = (object_masks.reshape(Bv, Nv, -1).sum(axis=2) == 0).astype(jnp.float32)

    flops = 2 * (m_pad * HWv * Dv + Bv * (Nv * Dv) * nh
                 + Bv * (Nv * hidden) * hidden + Bv * (Nv * 4) * hidden + Bv * hidden * Nv)
    bytes_accessed = (x_packed.size * 2 + bbox_flat.size * 4 + pad_mask.size * 4
                      + sum(int(v.size) * v.dtype.itemsize for v in packed.values())
                      + Bv * Nv * 4)
    cost = pl.CostEstimate(flops=int(flops), transcendentals=int(Bv * Nv * Dv),
                           bytes_accessed=int(bytes_accessed))

    scores = pl.pallas_call(
        partial(_fused_head_kernel, batch=Bv, num_patches=Nv, feat_dim=Dv,
                inv_sqrt_n=1.0 / math.sqrt(Nv)),
        out_shape=jax.ShapeDtypeStruct((Bv, Nv), jnp.float32),
        scratch_shapes=[pltpu.VMEM((Bv, Nv * Dv), jnp.float32)],
        cost_estimate=cost,
    )(x_packed, bbox_flat, pad_mask,
      packed["w_bb"], packed["b_bb"],
      packed["w_attn"], packed["b_attn"], packed["attn_sc"], packed["attn_sh"],
      packed["w_fc1h"], packed["w_fc1b"], packed["b_fc1"], packed["fc1_sc"], packed["fc1_sh"],
      packed["w_fc2"], packed["b_fc2"])

    # top_k computed for parity with spatial_rel (forward returns the scores)
    _, top_indices = jax.lax.top_k(scores, SEQ_LEN)
    return scores, top_indices


# ----------------------- parameters -----------------------
def _bn_affine(key, dim):
    k1, k2, k3, k4 = jax.random.split(key, 4)
    gamma = 1.0 + 0.1 * jax.random.normal(k1, (dim,), jnp.float32)
    beta = 0.1 * jax.random.normal(k2, (dim,), jnp.float32)
    mean = 0.1 * jax.random.normal(k3, (dim,), jnp.float32)
    var = 1.0 + jnp.abs(jax.random.normal(k4, (dim,), jnp.float32))
    scale = gamma / jnp.sqrt(var + BN_EPS)
    shift = beta - mean * scale
    return scale, shift


def init_params(key):
    ks = jax.random.split(key, 8)
    kin = 3 * H * W
    p = {}
    p["w_backbone"] = 0.05 * jax.random.normal(ks[0], (kin, FEAT_DIM), jnp.float32)
    p["b_backbone"] = 0.01 * jax.random.normal(ks[1], (FEAT_DIM,), jnp.float32)
    # attn: Linear(N*D, N*HIDDEN) + BN1d + ReLU
    p["w_attn"] = 0.05 * jax.random.normal(ks[2], (NUM_PATCHES * FEAT_DIM, NUM_PATCHES * HIDDEN), jnp.float32)
    p["b_attn"] = 0.01 * jax.random.normal(ks[3], (NUM_PATCHES * HIDDEN,), jnp.float32)
    p["attn_bn_scale"], p["attn_bn_shift"] = _bn_affine(ks[4], NUM_PATCHES * HIDDEN)
    # fc: Linear(N*(HIDDEN+4), HIDDEN) + BN1d + ReLU + Linear(HIDDEN, N)
    p["w_fc1"] = 0.05 * jax.random.normal(ks[5], (NUM_PATCHES * (HIDDEN + 4), HIDDEN), jnp.float32)
    p["b_fc1"] = 0.01 * jax.random.normal(ks[6], (HIDDEN,), jnp.float32)
    p["fc1_bn_scale"], p["fc1_bn_shift"] = _bn_affine(ks[7], HIDDEN)
    k8, k9 = jax.random.split(ks[0])
    p["w_fc2"] = 0.05 * jax.random.normal(k8, (HIDDEN, NUM_PATCHES), jnp.float32)
    p["b_fc2"] = 0.01 * jax.random.normal(k9, (NUM_PATCHES,), jnp.float32)
    return p


# ----------------------- main -----------------------
if __name__ == "__main__":
    key = jax.random.PRNGKey(0)
    kp, k1, k2, k3, k4 = jax.random.split(key, 5)
    params = init_params(kp)
    packed = pack_params(params)          # one-time weight packing, outside the jit

    scene_mask = (jax.random.uniform(k1, (B, 1, H, W)) > 0.7).astype(jnp.float32)
    target_mask = (jax.random.uniform(k2, (B, 1, H, W)) > 0.7).astype(jnp.float32)
    object_masks = (jax.random.uniform(k3, (B, NUM_PATCHES, 1, H, W)) > 0.7).astype(jnp.float32)
    # make a couple of patches empty to exercise the padding mask / masked_fill path
    object_masks = object_masks.at[0, NUM_PATCHES - 1].set(0.0)
    object_masks = object_masks.at[1, 2].set(0.0)
    bboxes = jax.random.uniform(k4, (B, NUM_PATCHES, 4), dtype=jnp.float32)

    scores, top_indices = obstacle_head_forward(packed, scene_mask, target_mask,
                                                object_masks, bboxes)
    jax.block_until_ready(scores)
    jax.block_until_ready(top_indices)
    assert scores.shape == (B, NUM_PATCHES)
    assert top_indices.shape == (B, SEQ_LEN)
    print("KERNEL_OK")
</pallas_src>

<mosaic_0001>
module attributes {stable_mosaic.version = 11 : i64} {
  func.func @_fused_head_kernel(%arg0: memref<32x256xbf16, #tpu.memory_space<vmem>>, %arg1: memref<2x32xf32, #tpu.memory_space<vmem>>, %arg2: memref<2x8xf32, #tpu.memory_space<vmem>>, %arg3: memref<256x64xbf16, #tpu.memory_space<vmem>>, %arg4: memref<1x64xf32, #tpu.memory_space<vmem>>, %arg5: memref<512x256xbf16, #tpu.memory_space<vmem>>, %arg6: memref<1x256xf32, #tpu.memory_space<vmem>>, %arg7: memref<1x256xf32, #tpu.memory_space<vmem>>, %arg8: memref<1x256xf32, #tpu.memory_space<vmem>>, %arg9: memref<256x32xbf16, #tpu.memory_space<vmem>>, %arg10: memref<32x32xbf16, #tpu.memory_space<vmem>>, %arg11: memref<1x32xf32, #tpu.memory_space<vmem>>, %arg12: memref<1x32xf32, #tpu.memory_space<vmem>>, %arg13: memref<1x32xf32, #tpu.memory_space<vmem>>, %arg14: memref<32x8xbf16, #tpu.memory_space<vmem>>, %arg15: memref<1x8xf32, #tpu.memory_space<vmem>>, %arg16: memref<2x8xf32, #tpu.memory_space<vmem>>, %arg17: memref<2x512xf32, #tpu.memory_space<vmem>>) attributes {dimension_semantics = [], scalar_prefetch = 0 : i64, scratch_operands = 1 : i64, tpu.core_type = #tpu.core_type<tc>} {
    %c0 = arith.constant 0 : index
    %c0_0 = arith.constant 0 : index
    %0 = vector.load %arg0[%c0, %c0_0] : memref<32x256xbf16, #tpu.memory_space<vmem>>, vector<32x256xbf16>
    %c0_1 = arith.constant 0 : index
    %c0_2 = arith.constant 0 : index
    %1 = vector.load %arg3[%c0_1, %c0_2] : memref<256x64xbf16, #tpu.memory_space<vmem>>, vector<256x64xbf16>
    %cst = arith.constant dense<0.000000e+00> : vector<32x64xf32>
    %2 = tpu.matmul %0, %1, %cst {dimension_numbers = #tpu.dot_dimension_numbers<[1], [0], [0], [1], [0, 0, 1, 1], [], []>} : vector<32x256xbf16>, vector<256x64xbf16>, vector<32x64xf32> -> vector<32x64xf32>
    %c0_3 = arith.constant 0 : index
    %c0_4 = arith.constant 0 : index
    %3 = vector.load %arg4[%c0_3, %c0_4] : memref<1x64xf32, #tpu.memory_space<vmem>>, vector<1x64xf32>
    %4 = vector.broadcast %3 : vector<1x64xf32> to vector<32x64xf32>
    %5 = arith.addf %2, %4 : vector<32x64xf32>
    %6 = vector.extract_strided_slice %5 {offsets = [0, 0], sizes = [16, 64], strides = [1, 1]} : vector<32x64xf32> to vector<16x64xf32>
    %7 = vector.shape_cast %6 : vector<16x64xf32> to vector<2x8x64xf32>
    %8 = vector.extract_strided_slice %5 {offsets = [16, 0], sizes = [2, 64], strides = [1, 1]} : vector<32x64xf32> to vector<2x64xf32>
    %9 = vector.extract_strided_slice %5 {offsets = [18, 0], sizes = [2, 64], strides = [1, 1]} : vector<32x64xf32> to vector<2x64xf32>
    %10 = vector.shape_cast %9 : vector<2x64xf32> to vector<2x1x64xf32>
    %11 = vector.broadcast %10 : vector<2x1x64xf32> to vector<2x8x64xf32>
    %12 = arith.mulf %7, %11 : vector<2x8x64xf32>
    %cst_5 = arith.constant 0.353553385 : f32
    %13 = vector.broadcast %cst_5 : f32 to vector<2x8x64xf32>
    %14 = arith.mulf %12, %13 : vector<2x8x64xf32>
    %cst_6 = arith.constant dense<0xFF800000> : vector<2x64xf32>
    %15 = vector.multi_reduction <maximumf>, %14, %cst_6 [1] : vector<2x8x64xf32> to vector<2x64xf32>
    %16 = vector.shape_cast %15 : vector<2x64xf32> to vector<2x1x64xf32>
    %17 = vector.broadcast %16 : vector<2x1x64xf32> to vector<2x8x64xf32>
    %18 = arith.subf %14, %17 : vector<2x8x64xf32>
    %19 = math.exp %18 : vector<2x8x64xf32>
    %cst_7 = arith.constant dense<0.000000e+00> : vector<2x64xf32>
    %20 = vector.multi_reduction <add>, %19, %cst_7 [1] : vector<2x8x64xf32> to vector<2x64xf32>
    %21 = vector.shape_cast %20 : vector<2x64xf32> to vector<2x1x64xf32>
    %22 = vector.broadcast %21 : vector<2x1x64xf32> to vector<2x8x64xf32>
    %23 = arith.divf %19, %22 : vector<2x8x64xf32>
    %24 = vector.shape_cast %8 : vector<2x64xf32> to vector<2x1x64xf32>
    %25 = vector.broadcast %24 : vector<2x1x64xf32> to vector<2x8x64xf32>
    %26 = arith.mulf %23, %25 : vector<2x8x64xf32>
    %27 = arith.subf %7, %26 : vector<2x8x64xf32>
    %28 = vector.extract_strided_slice %27 {offsets = [0, 0, 0], sizes = [2, 1, 64], strides = [1, 1, 1]} : vector<2x8x64xf32> to vector<2x1x64xf32>
    %29 = vector.shape_cast %28 : vector<2x1x64xf32> to vector<2x64xf32>
    %c0_8 = arith.constant 0 : index
    %c0_9 = arith.constant 0 : index
    %30 = vector.load %arg17[%c0_8, %c0_9] : memref<2x512xf32, #tpu.memory_space<vmem>>, vector<2x64xf32>
    tpu.vector_store %arg17[%c0_8, %c0_9], %29 {strides = array<i32>} : memref<2x512xf32, #tpu.memory_space<vmem>>, vector<2x64xf32>,
    %31 = vector.extract_strided_slice %27 {offsets = [0, 1, 0], sizes = [2, 1, 64], strides = [1, 1, 1]} : vector<2x8x64xf32> to vector<2x1x64xf32>
    %32 = vector.shape_cast %31 : vector<2x1x64xf32> to vector<2x64xf32>
    %c0_10 = arith.constant 0 : index
    %c64 = arith.constant 64 : index
    %33 = vector.load %arg17[%c0_10, %c64] : memref<2x512xf32, #tpu.memory_space<vmem>>, vector<2x64xf32>
    tpu.vector_store %arg17[%c0_10, %c64], %32 {strides = array<i32>} : memref<2x512xf32, #tpu.memory_space<vmem>>, vector<2x64xf32>,
    %34 = vector.extract_strided_slice %27 {offsets = [0, 2, 0], sizes = [2, 1, 64], strides = [1, 1, 1]} : vector<2x8x64xf32> to vector<2x1x64xf32>
    %35 = vector.shape_cast %34 : vector<2x1x64xf32> to vector<2x64xf32>
    %c0_11 = arith.constant 0 : index
    %c128 = arith.constant 128 : index
    %36 = vector.load %arg17[%c0_11, %c128] : memref<2x512xf32, #tpu.memory_space<vmem>>, vector<2x64xf32>
    tpu.vector_store %arg17[%c0_11, %c128], %35 {strides = array<i32>} : memref<2x512xf32, #tpu.memory_space<vmem>>, vector<2x64xf32>,
    %37 = vector.extract_strided_slice %27 {offsets = [0, 3, 0], sizes = [2, 1, 64], strides = [1, 1, 1]} : vector<2x8x64xf32> to vector<2x1x64xf32>
    %38 = vector.shape_cast %37 : vector<2x1x64xf32> to vector<2x64xf32>
    %c0_12 = arith.constant 0 : index
    %c192 = arith.constant 192 : index
    %39 = vector.load %arg17[%c0_12, %c192] : memref<2x512xf32, #tpu.memory_space<vmem>>, vector<2x64xf32>
    tpu.vector_store %arg17[%c0_12, %c192], %38 {strides = array<i32>} : memref<2x512xf32, #tpu.memory_space<vmem>>, vector<2x64xf32>,
    %40 = vector.extract_strided_slice %27 {offsets = [0, 4, 0], sizes = [2, 1, 64], strides = [1, 1, 1]} : vector<2x8x64xf32> to vector<2x1x64xf32>
    %41 = vector.shape_cast %40 : vector<2x1x64xf32> to vector<2x64xf32>
    %c0_13 = arith.constant 0 : index
    %c256 = arith.constant 256 : index
    %42 = vector.load %arg17[%c0_13, %c256] : memref<2x512xf32, #tpu.memory_space<vmem>>, vector<2x64xf32>
    tpu.vector_store %arg17[%c0_13, %c256], %41 {strides = array<i32>} : memref<2x512xf32, #tpu.memory_space<vmem>>, vector<2x64xf32>,
    %43 = vector.extract_strided_slice %27 {offsets = [0, 5, 0], sizes = [2, 1, 64], strides = [1, 1, 1]} : vector<2x8x64xf32> to vector<2x1x64xf32>
    %44 = vector.shape_cast %43 : vector<2x1x64xf32> to vector<2x64xf32>
    %c0_14 = arith.constant 0 : index
    %c320 = arith.constant 320 : index
    %45 = vector.load %arg17[%c0_14, %c320] : memref<2x512xf32, #tpu.memory_space<vmem>>, vector<2x64xf32>
    tpu.vector_store %arg17[%c0_14, %c320], %44 {strides = array<i32>} : memref<2x512xf32, #tpu.memory_space<vmem>>, vector<2x64xf32>,
    %46 = vector.extract_strided_slice %27 {offsets = [0, 6, 0], sizes = [2, 1, 64], strides = [1, 1, 1]} : vector<2x8x64xf32> to vector<2x1x64xf32>
    %47 = vector.shape_cast %46 : vector<2x1x64xf32> to vector<2x64xf32>
    %c0_15 = arith.constant 0 : index
    %c384 = arith.constant 384 : index
    %48 = vector.load %arg17[%c0_15, %c384] : memref<2x512xf32, #tpu.memory_space<vmem>>, vector<2x64xf32>
    tpu.vector_store %arg17[%c0_15, %c384], %47 {strides = array<i32>} : memref<2x512xf32, #tpu.memory_space<vmem>>, vector<2x64xf32>,
    %49 = vector.extract_strided_slice %27 {offsets = [0, 7, 0], sizes = [2, 1, 64], strides = [1, 1, 1]} : vector<2x8x64xf32> to vector<2x1x64xf32>
    %50 = vector.shape_cast %49 : vector<2x1x64xf32> to vector<2x64xf32>
    %c0_16 = arith.constant 0 : index
    %c448 = arith.constant 448 : index
    %51 = vector.load %arg17[%c0_16, %c448] : memref<2x512xf32, #tpu.memory_space<vmem>>, vector<2x64xf32>
    tpu.vector_store %arg17[%c0_16, %c448], %50 {strides = array<i32>} : memref<2x512xf32, #tpu.memory_space<vmem>>, vector<2x64xf32>,
    %c0_17 = arith.constant 0 : index
    %c0_18 = arith.constant 0 : index
    %52 = vector.load %arg17[%c0_17, %c0_18] : memref<2x512xf32, #tpu.memory_space<vmem>>, vector<2x512xf32>
    %53 = arith.truncf %52 : vector<2x512xf32> to vector<2x512xbf16>
    %c0_19 = arith.constant 0 : index
    %c0_20 = arith.constant 0 : index
    %54 = vector.load %arg5[%c0_19, %c0_20] : memref<512x256xbf16, #tpu.memory_space<vmem>>, vector<512x256xbf16>
    %cst_21 = arith.constant dense<0.000000e+00> : vector<2x256xf32>
    %55 = tpu.matmul %53, %54, %cst_21 {dimension_numbers = #tpu.dot_dimension_numbers<[1], [0], [0], [1], [0, 0, 1, 1], [], []>} : vector<2x512xbf16>, vector<512x256xbf16>, vector<2x256xf32> -> vector<2x256xf32>
    %c0_22 = arith.constant 0 : index
    %c0_23 = arith.constant 0 : index
    %56 = vector.load %arg6[%c0_22, %c0_23] : memref<1x256xf32, #tpu.memory_space<vmem>>, vector<1x256xf32>
    %57 = vector.broadcast %56 : vector<1x256xf32> to vector<2x256xf32>
    %58 = arith.addf %55, %57 : vector<2x256xf32>
    %c0_24 = arith.constant 0 : index
    %c0_25 = arith.constant 0 : index
    %59 = vector.load %arg7[%c0_24, %c0_25] : memref<1x256xf32, #tpu.memory_space<vmem>>, vector<1x256xf32>
    %60 = vector.broadcast %59 : vector<1x256xf32> to vector<2x256xf32>
    %61 = arith.mulf %58, %60 : vector<2x256xf32>
    %c0_26 = arith.constant 0 : index
    %c0_27 = arith.constant 0 : index
    %62 = vector.load %arg8[%c0_26, %c0_27] : memref<1x256xf32, #tpu.memory_space<vmem>>, vector<1x256xf32>
    %63 = vector.broadcast %62 : vector<1x256xf32> to vector<2x256xf32>
    %64 = arith.addf %61, %63 : vector<2x256xf32>
    %cst_28 = arith.constant 0.000000e+00 : f32
    %65 = vector.broadcast %cst_28 : f32 to vector<2x256xf32>
    %66 = arith.maximumf %64, %65 : vector<2x256xf32>
    %67 = arith.truncf %66 : vector<2x256xf32> to vector<2x256xbf16>
    %c0_29 = arith.constant 0 : index
    %c0_30 = arith.constant 0 : index
    %68 = vector.load %arg9[%c0_29, %c0_30] : memref<256x32xbf16, #tpu.memory_space<vmem>>, vector<256x32xbf16>
    %cst_31 = arith.constant dense<0.000000e+00> : vector<2x32xf32>
    %69 = tpu.matmul %67, %68, %cst_31 {dimension_numbers = #tpu.dot_dimension_numbers<[1], [0], [0], [1], [0, 0, 1, 1], [], []>} : vector<2x256xbf16>, vector<256x32xbf16>, vector<2x32xf32> -> vector<2x32xf32>
    %c0_32 = arith.constant 0 : index
    %c0_33 = arith.constant 0 : index
    %70 = vector.load %arg1[%c0_32, %c0_33] : memref<2x32xf32, #tpu.memory_space<vmem>>, vector<2x32xf32>
    %71 = arith.truncf %70 : vector<2x32xf32> to vector<2x32xbf16>
    %c0_34 = arith.constant 0 : index
    %c0_35 = arith.constant 0 : index
    %72 = vector.load %arg10[%c0_34, %c0_35] : memref<32x32xbf16, #tpu.memory_space<vmem>>, vector<32x32xbf16>
    %cst_36 = arith.constant dense<0.000000e+00> : vector<2x32xf32>
    %73 = tpu.matmul %71, %72, %cst_36 {dimension_numbers = #tpu.dot_dimension_numbers<[1], [0], [0], [1], [0, 0, 1, 1], [], []>} : vector<2x32xbf16>, vector<32x32xbf16>, vector<2x32xf32> -> vector<2x32xf32>
    %74 = arith.addf %69, %73 : vector<2x32xf32>
    %c0_37 = arith.constant 0 : index
    %c0_38 = arith.constant 0 : index
    %75 = vector.load %arg11[%c0_37, %c0_38] : memref<1x32xf32, #tpu.memory_space<vmem>>, vector<1x32xf32>
    %76 = vector.broadcast %75 : vector<1x32xf32> to vector<2x32xf32>
    %77 = arith.addf %74, %76 : vector<2x32xf32>
    %c0_39 = arith.constant 0 : index
    %c0_40 = arith.constant 0 : index
    %78 = vector.load %arg12[%c0_39, %c0_40] : memref<1x32xf32, #tpu.memory_space<vmem>>, vector<1x32xf32>
    %79 = vector.broadcast %78 : vector<1x32xf32> to vector<2x32xf32>
    %80 = arith.mulf %77, %79 : vector<2x32xf32>
    %c0_41 = arith.constant 0 : index
    %c0_42 = arith.constant 0 : index
    %81 = vector.load %arg13[%c0_41, %c0_42] : memref<1x32xf32, #tpu.memory_space<vmem>>, vector<1x32xf32>
    %82 = vector.broadcast %81 : vector<1x32xf32> to vector<2x32xf32>
    %83 = arith.addf %80, %82 : vector<2x32xf32>
    %cst_43 = arith.constant 0.000000e+00 : f32
    %84 = vector.broadcast %cst_43 : f32 to vector<2x32xf32>
    %85 = arith.maximumf %83, %84 : vector<2x32xf32>
    %86 = arith.truncf %85 : vector<2x32xf32> to vector<2x32xbf16>
    %c0_44 = arith.constant 0 : index
    %c0_45 = arith.constant 0 : index
    %87 = vector.load %arg14[%c0_44, %c0_45] : memref<32x8xbf16, #tpu.memory_space<vmem>>, vector<32x8xbf16>
    %cst_46 = arith.constant dense<0.000000e+00> : vector<2x8xf32>
    %88 = tpu.matmul %86, %87, %cst_46 {dimension_numbers = #tpu.dot_dimension_numbers<[1], [0], [0], [1], [0, 0, 1, 1], [], []>} : vector<2x32xbf16>, vector<32x8xbf16>, vector<2x8xf32> -> vector<2x8xf32>
    %c0_47 = arith.constant 0 : index
    %c0_48 = arith.constant 0 : index
    %89 = vector.load %arg15[%c0_47, %c0_48] : memref<1x8xf32, #tpu.memory_space<vmem>>, vector<1x8xf32>
    %90 = vector.broadcast %89 : vector<1x8xf32> to vector<2x8xf32>
    %91 = arith.addf %88, %90 : vector<2x8xf32>
    %c0_49 = arith.constant 0 : index
    %c0_50 = arith.constant 0 : index
    %92 = vector.load %arg2[%c0_49, %c0_50] : memref<2x8xf32, #tpu.memory_space<vmem>>, vector<2x8xf32>
    %cst_51 = arith.constant 5.000000e-01 : f32
    %93 = vector.broadcast %cst_51 : f32 to vector<2x8xf32>
    %94 = arith.cmpf ogt, %92, %93 : vector<2x8xf32>
    %cst_52 = arith.constant -9.99999997E-7 : f32
    %95 = vector.broadcast %cst_52 : f32 to vector<2x8xf32>
    %96 = arith.select %94, %95, %91 : vector<2x8xi1>, vector<2x8xf32>
    %c0_53 = arith.constant 0 : index
    %c0_54 = arith.constant 0 : index
    %97 = vector.load %arg16[%c0_53, %c0_54] : memref<2x8xf32, #tpu.memory_space<vmem>>, vector<2x8xf32>
    tpu.vector_store %arg16[%c0_53, %c0_54], %96 {strides = array<i32>} : memref<2x8xf32, #tpu.memory_space<vmem>>, vector<2x8xf32>,
    return
  }
}

</mosaic_0001>

<bundles_post_ra>
// kernel: obstacle_head_forward.1
= control target key start
LH: loop header
LB: loop body
LE: loop exit
PB: predicated region body
PF: predicated region fallthrough
CT: control target
= control target key end

     0   :  { %v1686_v41 = vmov 1966171168   ;;  %v265_v43 = vlaneseq  ;;  %vm300_vm0 = vcmask 523264   ;;  %vm374_vm1 = vcmask 1041409   ;;  %s2218_s3 = inlined_call_operand.vmem [shape: bf16[256,64], index: 3, kind: input, shape index: {}]   ;;  %s2219_s0 = inlined_call_operand.vmem [shape: bf16[32,256], index: 0, kind: input, shape index: {}]   ;;  %s2220_s5 = inlined_call_operand.vmem [shape: bf16[512,256], index: 5, kind: input, shape index: {}]   ;;  %s2221_s4 = inlined_call_operand.vmem [shape: f32[1,64], index: 4, kind: input, shape index: {}]   ;;  %s2222_s10 = inlined_call_operand.vmem [shape: bf16[32,32], index: 10, kind: input, shape index: {}]   ;;  %s2223_s1 = inlined_call_operand.vmem [shape: f32[2,32], index: 1, kind: input, shape index: {}]   ;;  %s2224_s9 = inlined_call_operand.vmem [shape: bf16[256,32], index: 9, kind: input, shape index: {}]   ;;  %s2225_s6 = inlined_call_operand.vmem [shape: f32[1,256], index: 6, kind: input, shape index: {}]   ;;  %s2226_s7 = inlined_call_operand.vmem [shape: f32[1,256], index: 7, kind: input, shape index: {}]   ;;  %s2227_s8 = inlined_call_operand.vmem [shape: f32[1,256], index: 8, kind: input, shape index: {}]   ;;  %s2228_s14 = inlined_call_operand.vmem [shape: bf16[32,8], index: 14, kind: input, shape index: {}]   ;;  %s2229_s11 = inlined_call_operand.vmem [shape: f32[1,32], index: 11, kind: input, shape index: {}]   ;;  %s2230_s12 = inlined_call_operand.vmem [shape: f32[1,32], index: 12, kind: input, shape index: {}]   ;;  %s2231_s13 = inlined_call_operand.vmem [shape: f32[1,32], index: 13, kind: input, shape index: {}]   ;;  %s2232_s2 = inlined_call_operand.vmem [shape: f32[2,8], index: 2, kind: input, shape index: {}]   ;;  %s2233_s15 = inlined_call_operand.vmem [shape: f32[1,8], index: 15, kind: input, shape index: {}]   ;;  %s2234_s16 = inlined_call_operand.vmem [shape: f32[2,8], index: 16, kind: output, shape index: {}]  }
   0x1   :  { %2236 = sst [smem:[#allocation3_spill]] %s2218_s3  ;;  %v1557_v11 = vld [vmem:[%s2219_s0 + $0x4] ss:$8 sps:$4 sm:$0xff]   ;;  %v1555_v17 = vld [vmem:[%s2219_s0] ss:$8 sps:$4 sm:$0xff]   ;;  %v263_v42 = vunpack.c.l.s4 %v1686_v41  ;;  %vm376_vm2 = vcmask 1043459  }
   0x2   :  { %s2237_s23 = sld [smem:[#allocation3_spill]]  ;;  %245 = vmatprep.mubr.bf16.mxu0 %v1557_v11  ;;  %v1558_v18 = vld [vmem:[%s2219_s0 + $0x14] ss:$8 sps:$4 sm:$0xff]   ;;  %v1560_v19 = vld [vmem:[%s2219_s0 + $0x10] ss:$8 sps:$4 sm:$0xff]   ;;  %v1893_v49 = vshrl.u32 %v265_v43, 7 }
   0x3   :  { %v1561_v20 = vld [vmem:[%s2220_s5 + $0x4] ss:$8 sps:$4 sm:$0xff]   ;;  %v1563_v21 = vld [vmem:[%s2220_s5] ss:$8 sps:$4 sm:$0xff]   ;;  %v1564_v22 = vld [vmem:[%s2220_s5 + $0x14] ss:$8 sps:$4 sm:$0xff]   ;;  %v264_v48 = vunpack.c.0.s8 %v263_v42 }
   0x4   :  { %900 = vmatprep.subr.bf16.mxu1 %v1561_v20  ;;  %v1566_v23 = vld [vmem:[%s2220_s5 + $0x10] ss:$8 sps:$4 sm:$0xff]   ;;  %v1567_v24 = vld [vmem:[%s2220_s5 + $0x24] ss:$8 sps:$4 sm:$0xff]   ;;  %v1569_v25 = vld [vmem:[%s2220_s5 + $0x20] ss:$8 sps:$4 sm:$0xff]  }
   0x5   :  { %901 = vmatpush1.bf16.msra.mxu1 %v1563_v21  ;;  %v1570_v26 = vld [vmem:[%s2220_s5 + $0x34] ss:$8 sps:$4 sm:$0xff]   ;;  %v1572_v27 = vld [vmem:[%s2220_s5 + $0x30] ss:$8 sps:$4 sm:$0xff]   ;;  %v1573_v28 = vld [vmem:[%s2220_s5 + $0x44] ss:$8 sps:$4 sm:$0xff]   ;;  %v267_v55 = vsub.s32 %v264_v48, %v1893_v49 }
   0x6   :  { %902 = vmatprep.subr.bf16.mxu1 %v1564_v22  ;;  %v1575_v29 = vld [vmem:[%s2220_s5 + $0x40] ss:$8 sps:$4 sm:$0xff]   ;;  %v1576_v30 = vld [vmem:[%s2220_s5 + $0x54] ss:$8 sps:$4 sm:$0xff]   ;;  %v1578_v31 = vld [vmem:[%s2220_s5 + $0x50] ss:$8 sps:$4 sm:$0xff]  }
   0x7   :  { %v1579_v32 = vld [vmem:[%s2220_s5 + $0x64] ss:$8 sps:$4 sm:$0xff]   ;;  %v1581_v33 = vld [vmem:[%s2220_s5 + $0x60] ss:$8 sps:$4 sm:$0xff]   ;;  %v1582_v34 = vld [vmem:[%s2220_s5 + $0x74] ss:$8 sps:$4 sm:$0xff]  }
   0x8   :  { %v1539_v0 = vld [vmem:[%s2237_s23 + $0x40] sm:$0xff]   ;;  %v1541_v2 = vld [vmem:[%s2237_s23 + $0x48] sm:$0xff]   ;;  %v1543_v4 = vld [vmem:[%s2237_s23 + $0x50] sm:$0xff]   ;;  %vm378_vm3 = vcmask 1045509   ;;  %vm380_vm4 = vcmask 1047559   ;;  %vm383_vm5 = vcmask 517120  }
   0x9   :  { %v1540_v1 = vld [vmem:[%s2237_s23] sm:$0xff]   ;;  %1456 = vmatprep.subr.bf16.mxu0 %v1539_v0  ;;  %v1542_v3 = vld [vmem:[%s2237_s23 + $0x8] sm:$0xff]   ;;  %v1544_v5 = vld [vmem:[%s2237_s23 + $0x10] sm:$0xff]   ;;  %903 = vmatpush1.bf16.msra.mxu1 %v1566_v23  ;;  %s1688_s3 = smov 64   ;;  %vm1690_vm6 = vmmov 0   ;;  %vm1064_vm7 = vcmask 261120  }
   0xa   :  { %1457 = vmatpush3.bf16.msra.mxu0 %v1540_v1  ;;  %v1545_v6 = vld [vmem:[%s2237_s23 + $0x58] sm:$0xff]   ;;  %v1547_v8 = vld [vmem:[%s2237_s23 + $0x60] sm:$0xff]   ;;  %v1549_v10 = vld [vmem:[%s2237_s23 + $0x68] sm:$0xff]   ;;  %904 = vmatprep.subr.bf16.mxu1 %v1567_v24  ;;  %vm395_vm8 = vcmask 1041920   ;;  %vm1339_vm10 = vcmask 58368  }
   0xb   :  { %1458 = vmatprep.subr.bf16.mxu0 %v1541_v2  ;;  %v1546_v7 = vld [vmem:[%s2237_s23 + $0x18] sm:$0xff]   ;;  %v1548_v9 = vld [vmem:[%s2237_s23 + $0x20] sm:$0xff]   ;;  %v1550_v12 = vld [vmem:[%s2237_s23 + $0x28] sm:$0xff]   ;;  %v1915_v2 = vsub.s32 0, %v1893_v49 }
   0xc   :  { %v1551_v13 = vld [vmem:[%s2237_s23 + $0x70] sm:$0xff]   ;;  %v1553_v15 = vld [vmem:[%s2237_s23 + $0x78] sm:$0xff]   ;;  %v1585_v36 = vld [vmem:[%s2220_s5 + $0x84] ss:$8 sps:$4 sm:$0xff]  }
   0xd   :  { %v1552_v14 = vld [vmem:[%s2237_s23 + $0x30] sm:$0xff]   ;;  %v1554_v16 = vld [vmem:[%s2237_s23 + $0x38] sm:$0xff]   ;;  %905 = vmatpush1.bf16.msra.mxu1 %v1569_v25  ;;  %v1587_v44 = vld [vmem:[%s2220_s5 + $0x80] ss:$8 sps:$4 sm:$0xff]  }
   0xe   :  { %1459 = vmatpush3.bf16.msra.mxu0 %v1542_v3  ;;  %906 = vmatprep.subr.bf16.mxu1 %v1570_v26  ;;  %v1584_v35 = vld [vmem:[%s2220_s5 + $0x70] ss:$8 sps:$4 sm:$0xff]   ;;  %v1588_v46 = vld [vmem:[%s2220_s5 + $0x94] ss:$8 sps:$4 sm:$0xff]   ;;  %v1591_v51 = vld [vmem:[%s2220_s5 + $0xa4] ss:$8 sps:$4 sm:$0xff]  }
   0xf   :  { %1460 = vmatprep.subr.bf16.mxu0 %v1543_v4  ;;  %v1590_v50 = vld [vmem:[%s2220_s5 + $0x90] ss:$8 sps:$4 sm:$0xff]   ;;  %v1593_v57 = vld [vmem:[%s2220_s5 + $0xa0] ss:$8 sps:$4 sm:$0xff]  }
  0x10   :  { %v1345_v58 = vld [vmem:[%s2221_s4] ss:$0 sm:$0xff] }
  0x11   :  { %907 = vmatpush1.bf16.msra.mxu1 %v1572_v27 }
  0x12   :  { %1461 = vmatpush3.bf16.msra.mxu0 %v1544_v5  ;;  %908 = vmatprep.subr.bf16.mxu1 %v1573_v28 }
  0x13   :  { %1462 = vmatprep.subr.bf16.mxu0 %v1545_v6 }
  0x15   :  { %909 = vmatpush1.bf16.msra.mxu1 %v1575_v29 }
  0x16   :  { %1463 = vmatpush3.bf16.msra.mxu0 %v1546_v7  ;;  %910 = vmatprep.subr.bf16.mxu1 %v1576_v30 }
  0x17   :  { %1464 = vmatprep.subr.bf16.mxu0 %v1547_v8 }
  0x19   :  { %911 = vmatpush1.bf16.msra.mxu1 %v1578_v31 }
  0x1a   :  { %1465 = vmatpush3.bf16.msra.mxu0 %v1548_v9  ;;  %912 = vmatprep.subr.bf16.mxu1 %v1579_v32 }
  0x1b   :  { %1466 = vmatprep.subr.bf16.mxu0 %v1549_v10 }
  0x1d   :  { %913 = vmatpush1.bf16.msra.mxu1 %v1581_v33 }
  0x1e   :  { %1467 = vmatpush3.bf16.msra.mxu0 %v1550_v12  ;;  %914 = vmatprep.subr.bf16.mxu1 %v1582_v34 }
  0x1f   :  { %1468 = vmatprep.subr.bf16.mxu0 %v1551_v13 }
  0x21   :  { %915 = vmatpush1.bf16.msra.mxu1 %v1584_v35 }
  0x22   :  { %1469 = vmatpush3.bf16.msra.mxu0 %v1552_v14  ;;  %916 = vmatprep.subr.bf16.mxu1 %v1585_v36 }
  0x23   :  { %1470 = vmatprep.subr.bf16.mxu0 %v1553_v15 }
  0x25   :  { %917 = vmatpush1.bf16.msra.mxu1 %v1587_v44 }
  0x26   :  { %1471 = vmatpush3.bf16.msra.mxu0 %v1554_v16  ;;  %918 = vmatprep.subr.bf16.mxu1 %v1588_v46  ;;  %v1687_v46 = vmov 1983009808  }
  0x29   :  { %246 = vmatmul.mubr.bf16.vlgmr.msra.gmra.mrb[0].mxu0 %v1555_v17  ;;  %919 = vmatpush1.bf16.msra.mxu1 %v1590_v50 }
  0x2a   :  { %253 = vmatprep.mubr.bf16.mxu0 %v1558_v18  ;;  %920 = vmatprep.subr.bf16.mxu1 %v1591_v51 }
  0x2d   :  { %921 = vmatpush1.bf16.msra.mxu1 %v1593_v57 }
  0x31   :  { %254 = vmatmul.mubr.bf16.gmra.mrb[4].mxu0 %v1560_v19 }
  0xfc   :  { %v1472_v37 = vpop.f32.mrb[0].mxu0 }
  0xfd   :  { %v1473_v38 = vpop.f32.mrb[1].mxu0 }
  0xfe   :  { %v1474_v39 = vadd.f32 %v1473_v38, %v1472_v37  ;;  %v1475_v40 = vpop.f32.mrb[2].mxu0 }
  0xff   :  { %v1476_v45 = vpop.f32.mrb[3].mxu0 }
 0x100   :  { %v1477_v47 = vadd.f32 %v1476_v45, %v1475_v40  ;;  %v1917_v3 = vadd.f32 %v1474_v39, %v1345_v58 }
 0x102   :  { %v1922_v6 = vadd.f32 %v1477_v47, %v1345_v58  ;;  %v356_v47 = vunpack.c.l.s4 %v1687_v46  ;;  %v1608_v46 = vld [vmem:[%s2220_s5 + $0xf0] ss:$8 sps:$4 sm:$0xff]  }
 0x104   :  { %v1478_v52 = vpop.f32.mrb[4].mxu0  ;;  %v357_v48 = vunpack.c.0.s8 %v356_v47 }
 0x105   :  { %v1479_v53 = vpop.f32.mrb[5].mxu0 }
 0x106   :  { %v1480_v54 = vadd.f32 %v1479_v53, %v1478_v52  ;;  %v1481_v56 = vpop.f32.mrb[6].mxu0 }
 0x107   :  { %v1482_v59 = vpop.f32.mrb[7].mxu0 }
 0x108   :  { %v256_v60 = vadd.f32 %v1480_v54, %v1345_v58  ;;  %v1594_v54 = vld [vmem:[%s2220_s5 + $0xb4] ss:$8 sps:$4 sm:$0xff]   ;;  %v1942_v59 = vsub.s32 %v357_v48, %v1893_v49 }
 0x109   :  { %922 = vmatprep.subr.bf16.mxu1 %v1594_v54 }
 0x10a   :  { %v268_v61 = vrot.slane %v256_v60, %v267_v55 }
 0x10c   :  { %v269_v62 = vcombine.high %v268_v61, %v268_v61  ;;  %v1908_v63 = vrot.slane %v268_v61, %v267_v55 }
 0x10e   :  { %v1910_v0 = vrot.slane %v269_v62, %v267_v55  ;;  %v284_v1 = vcombine.high %v1908_v63, %v1908_v63  ;;  %v342_v52 = vrot.slane %v1908_v63, %v1915_v2  ;;  %v1596_v55 = vld [vmem:[%s2220_s5 + $0xb0] ss:$8 sps:$4 sm:$0xff]   ;;  %v1597_v62 = vld [vmem:[%s2220_s5 + $0xc4] ss:$8 sps:$4 sm:$0xff]   ;;  %v1599_v63 = vld [vmem:[%s2220_s5 + $0xc0] ss:$8 sps:$4 sm:$0xff]  }
 0x10f   :  { %923 = vmatpush1.bf16.msra.mxu1 %v1596_v55 }
 0x110   :  { %v285_v4 = vcombine.high %v1910_v0, %v1910_v0  ;;  %v289_v5 = vrot.slane %v284_v1, %v1915_v2  ;;  %v346_v57 = vrot.slane %v1910_v0, %v1915_v2  ;;  %924 = vmatprep.subr.bf16.mxu1 %v1597_v62  ;;  %v1658_v62 = vld [vmem:[%s2222_s10] sm:$0xff]  }
 0x112   :  { %v293_v7 = vrot.slane %v285_v4, %v1915_v2  ;;  %v296_v8 = vmul.f32 %v289_v5, %v1917_v3 }
 0x113   :  { %925 = vmatpush1.bf16.msra.mxu1 %v1599_v63  ;;  %v1659_v63 = vld [vmem:[%s2222_s10 + $0x8] sm:$0xff]  }
 0x114   :  { %v297_v9 = vmul.f32 %v293_v7, %v1922_v6  ;;  %v298_v10 = vmul.f32 0.35355338, %v296_v8 }
 0x116   :  { %v299_v11 = vmul.f32 0.35355338, %v297_v9  ;;  %v301_v12 = vsel %vm300_vm0, %v298_v10, -inf }
 0x117   :  { %v302_v13 = vrot.slane %v301_v12, 4 }
 0x118   :  { %v308_v14 = vsel %vm300_vm0, %v299_v11, -inf }
 0x119   :  { %v303_v15 = vmax.f32 %v301_v12, %v302_v13  ;;  %v309_v16 = vrot.slane %v308_v14, 4 }
 0x11b   :  { %v304_v17 = vrot.slane %v303_v15, 2  ;;  %v310_v18 = vmax.f32 %v308_v14, %v309_v16 }
 0x11d   :  { %v305_v19 = vmax.f32 %v303_v15, %v304_v17  ;;  %v311_v20 = vrot.slane %v310_v18, 2 }
 0x11f   :  { %v306_v21 = vrot.slane %v305_v19, 1  ;;  %v312_v22 = vmax.f32 %v310_v18, %v311_v20 }
 0x121   :  { %v307_v23 = vmax.f32 %v305_v19, %v306_v21  ;;  %v313_v24 = vrot.slane %v312_v22, 1 }
 0x123   :  { %v314_v25 = vmax.f32 %v312_v22, %v313_v24  ;;  %v315_v26 = vsub.f32 %v298_v10, %v307_v23 }
 0x125   :  { %v316_v27 = vsub.f32 %v299_v11, %v314_v25  ;;  %v317_v28 = vmul.f32 1.442695, %v315_v26  ;;  %v1603_v11 = vld [vmem:[%s2220_s5 + $0xe4] ss:$8 sps:$4 sm:$0xff]  }
 0x127   :  { %1678 = vpow2.f32 %v317_v28  ;;  %v319_v29 = vmul.f32 1.442695, %v316_v27  ;;  %v1605_v28 = vld [vmem:[%s2220_s5 + $0xe0] ss:$8 sps:$4 sm:$0xff]  }
 0x129   :  { %1680 = vpow2.f32 %v319_v29 }
 0x131   :  { %v1679_v30 = vpop.eup %1678 }
 0x132   :  { %v321_v31 = vsel %vm300_vm0, %v1679_v30, 0.0 }
 0x133   :  { %v1681_v32 = vpop.eup %1680  ;;  %v322_v33 = vrot.slane %v321_v31, 4 }
 0x134   :  { %v328_v34 = vsel %vm300_vm0, %v1681_v32, 0.0 }
 0x135   :  { %v323_v35 = vadd.f32 %v322_v33, %v321_v31  ;;  %v329_v36 = vrot.slane %v328_v34, 4  ;;  %v1606_v33 = vld [vmem:[%s2220_s5 + $0xf4] ss:$8 sps:$4 sm:$0xff]  }
 0x137   :  { %v324_v37 = vrot.slane %v323_v35, 2  ;;  %v330_v38 = vadd.f32 %v329_v36, %v328_v34 }
 0x139   :  { %v325_v39 = vadd.f32 %v324_v37, %v323_v35  ;;  %v331_v40 = vrot.slane %v330_v38, 2 }
 0x13b   :  { %v326_v41 = vrot.slane %v325_v39, 1  ;;  %v332_v42 = vadd.f32 %v331_v40, %v330_v38 }
 0x13d   :  { %v327_v43 = vadd.f32 %v326_v41, %v325_v39  ;;  %v333_v44 = vrot.slane %v332_v42, 1 }
 0x13f   :  { %v334_v45 = vadd.f32 %v333_v44, %v332_v42  ;;  %1682 = vrcp.f32 %v327_v43 }
 0x141   :  { %1684 = vrcp.f32 %v334_v45 }
 0x149   :  { %v1683_v50 = vpop.eup %1682 }
 0x14a   :  { %v336_v51 = vmul.f32 %v1683_v50, %v1679_v30 }
 0x14b   :  { %v1685_v53 = vpop.eup %1684 }
 0x14c   :  { %v338_v56 = vmul.f32 %v1685_v53, %v1681_v32  ;;  %v349_v58 = vmul.f32 %v342_v52, %v336_v51 }
 0x14e   :  { %v350_v60 = vmul.f32 %v346_v57, %v338_v56  ;;  %v351_v61 = vsub.f32 %v1917_v3, %v349_v58  ;;  %v1600_v3 = vld [vmem:[%s2220_s5 + $0xd4] ss:$8 sps:$4 sm:$0xff]   ;;  %v1612_v56 = vld [vmem:[%s2220_s5 + $0x104] ss:$8 sps:$4 sm:$0xff]  }
 0x14f   :  { %926 = vmatprep.subr.bf16.mxu1 %v1600_v3  ;;  %v1661_v3 = vld [vmem:[%s2224_s9] sm:$0xff]  }
 0x150   :  { %v352_v1 = vsub.f32 %v1922_v6, %v350_v60  ;;  %v361_v0 = vrot.slane %v351_v61, %v1942_v59  ;;  %v419_v4 = vcombine.high %v351_v61, %v351_v61  ;;  %v1602_v6 = vld [vmem:[%s2220_s5 + $0xd0] ss:$8 sps:$4 sm:$0xff]   ;;  %v1689_v61 = vmov 0.0  }
 0x151   :  { %927 = vmatpush1.bf16.msra.mxu1 %v1602_v6  ;;  %1512 = vmatprep.subr.bf16.mxu0 %v1689_v61  ;;  %v1666_v6 = vld [vmem:[%s2224_s9 + $0x58] sm:$0xff]  }
 0x152   :  { %v368_v5 = vrot.slane %v352_v1, %v1942_v59  ;;  %v427_v7 = vcombine.high %v352_v1, %v352_v1  ;;  %v385_v8 = vrot.slane %v361_v0, 1  ;;  %v426_v9 = vrot.slane %v419_v4, %v1942_v59  ;;  %928 = vmatprep.subr.bf16.mxu1 %v1603_v11  ;;  %1516 = vmatprep.mubr.msk.bf16.mxu0 %vm1690_vm6, %v1689_v61  ;;  %v1046_v1 = vld [vmem:[%s2223_s1] sm:$0x3] }
 0x153   :  { %v397_v10 = vcombine.high %v361_v0, %v361_v0  ;;  %1513 = vmatpush3.bf16.msra.mxu0 %v1658_v62  ;;  %v1047_v4 = vpack.c.bf16 %v1046_v1, %v1046_v1  ;;  %v1668_v11 = vld [vmem:[%s2224_s9 + $0x60] sm:$0xff]   ;;  %v1672_v62 = vld [vmem:[%s2224_s9 + $0x70] sm:$0xff]   ;;  %v1674_v1 = vld [vmem:[%s2224_s9 + $0x78] sm:$0xff]  }
 0x154   :  { %v388_v12 = vsel %vm374_vm1, %v368_v5, %v385_v8  ;;  %v434_v13 = vrot.slane %v427_v7, %v1942_v59  ;;  %v444_v14 = vrot.slane %v426_v9, 1  ;;  %v398_v15 = vcombine.high %v368_v5, %v368_v5  ;;  %1514 = vmatprep.subr.bf16.mxu0 %v1689_v61  ;;  %v1663_v7 = vld [vmem:[%s2224_s9 + $0x8] sm:$0xff]   ;;  %v1664_v8 = vld [vmem:[%s2224_s9 + $0x50] sm:$0xff]  }
 0x155   :  { %v389_v16 = vsel %vm376_vm2, %v368_v5, %v388_v12  ;;  %v408_v17 = vrot.slane %v397_v10, 1  ;;  %v455_v18 = vcombine.high %v426_v9, %v426_v9  ;;  %v373_v19 = vrot.slane %v368_v5, 7  ;;  %929 = vmatpush1.bf16.msra.mxu1 %v1605_v28  ;;  %v1669_v12 = vld [vmem:[%s2224_s9 + $0x20] sm:$0xff]  }
 0x156   :  { %v390_v20 = vsel %vm378_vm3, %v368_v5, %v389_v16  ;;  %v447_v21 = vsel %vm374_vm1, %v434_v13, %v444_v14  ;;  %v456_v22 = vcombine.high %v434_v13, %v434_v13  ;;  %v437_v23 = vrot.slane %v434_v13, 7  ;;  %930 = vmatprep.subr.bf16.mxu1 %v1606_v33  ;;  %v1618_v28 = vld [vmem:[%s2220_s5 + $0x124] ss:$8 sps:$4 sm:$0xff]   ;;  %v1622_v33 = vld [vmem:[%s2220_s5 + $0x140] ss:$8 sps:$4 sm:$0xff]  }
 0x157   :  { %v391_v24 = vsel %vm380_vm4, %v368_v5, %v390_v20  ;;  %v448_v25 = vsel %vm376_vm2, %v434_v13, %v447_v21  ;;  %v411_v26 = vsel %vm374_vm1, %v398_v15, %v408_v17  ;;  %v466_v27 = vrot.slane %v455_v18, 1  ;;  %1515 = vmatpush3.bf16.msra.mxu0 %v1659_v63  ;;  %v1662_v5 = vld [vmem:[%s2224_s9 + $0x48] sm:$0xff]   ;;  %v1673_v63 = vld [vmem:[%s2224_s9 + $0x30] sm:$0xff]  }
 0x158   :  { %392 = vrot.lane.b32.xlu0 %v391_v24, %s1688_s3  ;;  %v449_v29 = vsel %vm378_vm3, %v434_v13, %v448_v25  ;;  %v412_v30 = vsel %vm376_vm2, %v398_v15, %v411_v26  ;;  %v375_v31 = vsel %vm374_vm1, %v373_v19, %v361_v0  ;;  %v438_v32 = vsel %vm374_vm1, %v437_v23, %v426_v9  ;;  %v1660_v0 = vld [vmem:[%s2224_s9 + $0x40] sm:$0xff]   ;;  %v1665_v9 = vld [vmem:[%s2224_s9 + $0x10] sm:$0xff]  }
 0x159   :  { %v450_v34 = vsel %vm380_vm4, %v434_v13, %v449_v29  ;;  %v413_v35 = vsel %vm378_vm3, %v398_v15, %v412_v30  ;;  %v469_v36 = vsel %vm374_vm1, %v456_v22, %v466_v27  ;;  %v377_v37 = vsel %vm376_vm2, %v373_v19, %v375_v31  ;;  %931 = vmatpush1.bf16.msra.mxu1 %v1608_v46  ;;  %v1615_v26 = vld [vmem:[%s2220_s5 + $0x114] ss:$8 sps:$4 sm:$0xff]   ;;  %v1616_v29 = vld [vmem:[%s2220_s5 + $0x120] ss:$8 sps:$4 sm:$0xff]   ;;  %v1619_v31 = vld [vmem:[%s2220_s5 + $0x130] ss:$8 sps:$4 sm:$0xff]  }
 0x15a   :  { %451 = vrot.lane.b32.xlu1 %v450_v34, %s1688_s3  ;;  %v414_v38 = vsel %vm380_vm4, %v398_v15, %v413_v35  ;;  %v470_v39 = vsel %vm376_vm2, %v456_v22, %v469_v36  ;;  %v379_v40 = vsel %vm378_vm3, %v373_v19, %v377_v37  ;;  %v439_v41 = vsel %vm376_vm2, %v437_v23, %v438_v32  ;;  %v1621_v30 = vld [vmem:[%s2220_s5 + $0x134] ss:$8 sps:$4 sm:$0xff]   ;;  %v1624_v32 = vld [vmem:[%s2220_s5 + $0x144] ss:$8 sps:$4 sm:$0xff]   ;;  %v1625_v35 = vld [vmem:[%s2220_s5 + $0x150] ss:$8 sps:$4 sm:$0xff]  }
 0x15b   :  { %v471_v42 = vsel %vm378_vm3, %v456_v22, %v470_v39  ;;  %v381_v43 = vsel %vm380_vm4, %v373_v19, %v379_v40  ;;  %v440_v44 = vsel %vm378_vm3, %v437_v23, %v439_v41  ;;  %v401_v45 = vrot.slane %v398_v15, 7  ;;  %941 = vmatprep.subr.bf16.mxu1 %v1612_v56  ;;  %1487 = vmatprep.subr.bf16.mxu0 %v1660_v0  ;;  %v1627_v34 = vld [vmem:[%s2220_s5 + $0x154] ss:$8 sps:$4 sm:$0xff]   ;;  %v1630_v36 = vld [vmem:[%s2220_s5 + $0x164] ss:$8 sps:$4 sm:$0xff]  }
 0x15c   :  { %415 = vrot.lane.b32.xlu0 %v414_v38, %s1688_s3  ;;  %v472_v47 = vsel %vm380_vm4, %v456_v22, %v471_v42  ;;  %384 = vst.msk [vmem:[#allocation2] sm:$0x3] %vm383_vm5, %v381_v43  ;;  %v441_v48 = vsel %vm380_vm4, %v437_v23, %v440_v44  ;;  %v459_v50 = vrot.slane %v456_v22, 7  ;;  %1517 = vmatmul.mubr.msk.bf16.vlgmr.msra.gmra.mrb[8].mxu0 %vm1064_vm7, %v1047_v4  ;;  %v1610_v23 = vld [vmem:[%s2220_s5 + $0x100] ss:$8 sps:$4 sm:$0xff]   ;;  %v1675_v0 = vld [vmem:[%s2224_s9 + $0x38] sm:$0xff]  }
 0x15d   :  { %443 = vst.msk [vmem:[#allocation2 + $0x4] sm:$0x3] %vm383_vm5, %v441_v48  ;;  %v402_v51 = vsel %vm374_vm1, %v401_v45, %v397_v10  ;;  %1488 = vmatpush3.bf16.msra.mxu0 %v1661_v3  ;;  %v1667_v10 = vld [vmem:[%s2224_s9 + $0x18] sm:$0xff]   ;;  %v1628_v37 = vld [vmem:[%s2220_s5 + $0x160] ss:$8 sps:$4 sm:$0xff]  }
 0x15e   :  { %473 = vrot.lane.b32.xlu1 %v472_v47, %s1688_s3  ;;  %v403_v52 = vsel %vm376_vm2, %v401_v45, %v402_v51  ;;  %v460_v53 = vsel %vm374_vm1, %v459_v50, %v455_v18  ;;  %1489 = vmatprep.subr.bf16.mxu0 %v1662_v5  ;;  %v1633_v38 = vld [vmem:[%s2220_s5 + $0x174] ss:$8 sps:$4 sm:$0xff]   ;;  %v1631_v39 = vld [vmem:[%s2220_s5 + $0x170] ss:$8 sps:$4 sm:$0xff]   ;;  %v1636_v40 = vld [vmem:[%s2220_s5 + $0x184] ss:$8 sps:$4 sm:$0xff]  }
 0x15f   :  { %v404_v54 = vsel %vm378_vm3, %v401_v45, %v403_v52  ;;  %v461_v55 = vsel %vm376_vm2, %v459_v50, %v460_v53  ;;  %v1634_v41 = vld [vmem:[%s2220_s5 + $0x180] ss:$8 sps:$4 sm:$0xff]   ;;  %v1639_v42 = vld [vmem:[%s2220_s5 + $0x194] ss:$8 sps:$4 sm:$0xff]   ;;  %v1637_v43 = vld [vmem:[%s2220_s5 + $0x190] ss:$8 sps:$4 sm:$0xff]  }
 0x160   :  { %v405_v57 = vsel %vm380_vm4, %v401_v45, %v404_v54  ;;  %v462_v58 = vsel %vm378_vm3, %v459_v50, %v461_v55  ;;  %v1642_v44 = vld [vmem:[%s2220_s5 + $0x1a4] ss:$8 sps:$4 sm:$0xff]   ;;  %v1640_v45 = vld [vmem:[%s2220_s5 + $0x1a0] ss:$8 sps:$4 sm:$0xff]   ;;  %v1645_v46 = vld [vmem:[%s2220_s5 + $0x1b4] ss:$8 sps:$4 sm:$0xff]  }
 0x161   :  { %407 = vst.msk [vmem:[#allocation2 + $0x2] sm:$0x3] %vm383_vm5, %v405_v57  ;;  %v463_v60 = vsel %vm380_vm4, %v459_v50, %v462_v58  ;;  %1490 = vmatpush3.bf16.msra.mxu0 %v1663_v7  ;;  %v1643_v47 = vld [vmem:[%s2220_s5 + $0x1b0] ss:$8 sps:$4 sm:$0xff]   ;;  %v1648_v48 = vld [vmem:[%s2220_s5 + $0x1c4] ss:$8 sps:$4 sm:$0xff]  }
 0x162   :  { %465 = vst.msk [vmem:[#allocation2 + $0x6] sm:$0x3] %vm383_vm5, %v463_v60  ;;  %1491 = vmatprep.subr.bf16.mxu0 %v1664_v8  ;;  %v1646_v50 = vld [vmem:[%s2220_s5 + $0x1c0] ss:$8 sps:$4 sm:$0xff]   ;;  %v1651_v51 = vld [vmem:[%s2220_s5 + $0x1d4] ss:$8 sps:$4 sm:$0xff]  }
 0x163   :  { %v1649_v52 = vld [vmem:[%s2220_s5 + $0x1d0] ss:$8 sps:$4 sm:$0xff]   ;;  %v1654_v53 = vld [vmem:[%s2220_s5 + $0x1e4] ss:$8 sps:$4 sm:$0xff]   ;;  %v1652_v54 = vld [vmem:[%s2220_s5 + $0x1e0] ss:$8 sps:$4 sm:$0xff]  }
 0x164   :  { %v1657_v55 = vld [vmem:[%s2220_s5 + $0x1f4] ss:$8 sps:$4 sm:$0xff]   ;;  %v1655_v56 = vld [vmem:[%s2220_s5 + $0x1f0] ss:$8 sps:$4 sm:$0xff]   ;;  %v1670_v58 = vld [vmem:[%s2224_s9 + $0x68] sm:$0xff]  }
 0x165   :  { %1492 = vmatpush3.bf16.msra.mxu0 %v1665_v9  ;;  %v1671_v60 = vld [vmem:[%s2224_s9 + $0x28] sm:$0xff]   ;;  %v568_v8 = vld [vmem:[%s2225_s6] sm:$0x3]  ;;  %v576_v9 = vsub.s32 1, %v1893_v49 }
 0x166   :  { %1493 = vmatprep.subr.bf16.mxu0 %v1666_v6  ;;  %v982_v6 = vld [vmem:[%s2226_s7] sm:$0x3] }
 0x169   :  { %1494 = vmatpush3.bf16.msra.mxu0 %v1667_v10  ;;  %v573_v10 = vrot.slane %v568_v8, %v1915_v2 }
 0x16a   :  { %1495 = vmatprep.subr.bf16.mxu0 %v1668_v11  ;;  %v996_v11 = vld [vmem:[%s2227_s8] sm:$0x3] }
 0x16d   :  { %1496 = vmatpush3.bf16.msra.mxu0 %v1669_v12  ;;  %v577_v12 = vrot.slane %v568_v8, %v576_v9 }
 0x16e   :  { %1497 = vmatprep.subr.bf16.mxu0 %v1670_v58 }
 0x171   :  { %1498 = vmatpush3.bf16.msra.mxu0 %v1671_v60 }
 0x172   :  { %1499 = vmatprep.subr.bf16.mxu0 %v1672_v62 }
 0x175   :  { %1500 = vmatpush3.bf16.msra.mxu0 %v1673_v63 }
 0x176   :  { %1501 = vmatprep.subr.bf16.mxu0 %v1674_v1 }
 0x179   :  { %1502 = vmatpush3.bf16.msra.mxu0 %v1675_v0 }
 0x17a   :  { %1520 = vmatprep.subr.bf16.mxu0 %v1689_v61 }
 0x1ca   :  { %v393_v13 = vpop.permute.xlu0 %392 }
 0x1cb   :  { %396 = vst.msk [vmem:[#allocation2] sm:$0x3] %vm395_vm8, %v393_v13  ;;  %v987_v13 = vrot.slane %v982_v6, %v1915_v2 }
 0x1cc   :  { %v452_v14 = vpop.permute.xlu1 %451 }
 0x1cd   :  { %454 = vst.msk [vmem:[#allocation2 + $0x4] sm:$0x3] %vm395_vm8, %v452_v14 }
 0x1ce   :  { %v416_v15 = vpop.permute.xlu0 %415 }
 0x1cf   :  { %418 = vst.msk [vmem:[#allocation2 + $0x2] sm:$0x3] %vm395_vm8, %v416_v15  ;;  %v991_v15 = vrot.slane %v982_v6, %v576_v9 }
 0x1d0   :  { %v474_v16 = vpop.permute.xlu1 %473 }
 0x1d1   :  { %476 = vst.msk [vmem:[#allocation2 + $0x6] sm:$0x3] %vm395_vm8, %v474_v16 }
 0x1d8   :  { %v477_v17 = vld [vmem:[#allocation2] sm:$0xff] }
 0x1d9   :  { %v479_v18 = vcombine.high %v477_v17, %v477_v17  ;;  %v486_v19 = vrot.slane %v477_v17, %v1942_v59  ;;  %v1001_v17 = vrot.slane %v996_v11, %v1915_v2  ;;  %v1676_v2 = vld [vmem:[%s2228_s14] sm:$0xff]  }
 0x1db   :  { %v494_v20 = vcombine.high %v486_v19, %v486_v19  ;;  %v2059_v21 = vrot.slane %v479_v18, %v1942_v59  ;;  %v500_v25 = vpack.c.bf16 %v486_v19, %v486_v19  ;;  %v1613_v59 = vld [vmem:[%s2220_s5 + $0x110] ss:$8 sps:$4 sm:$0xff]   ;;  %v1005_v19 = vrot.slane %v996_v11, %v576_v9 }
 0x1dd   :  { %v501_v22 = vpack.c.bf16 %v494_v20, %v494_v20  ;;  %v495_v24 = vcombine.high %v2059_v21, %v2059_v21  ;;  %v502_v57 = vpack.c.bf16 %v2059_v21, %v2059_v21 }
 0x1df   :  { %932 = vmatprep.mubr.bf16.mxu1 %v501_v22  ;;  %v503_v27 = vpack.c.bf16 %v495_v24, %v495_v24 }
 0x1e0   :  { %933 = vmatmul.mubr.bf16.vlgmr.msra.gmra.mrb[0].mxu1 %v500_v25 }
 0x1e1   :  { %942 = vmatpush1.bf16.msra.mxu1 %v1610_v23  ;;  %973 = vmatprep.mubr.bf16.mxu1 %v503_v27 }
 0x1e2   :  { %943 = vmatprep.subr.bf16.mxu1 %v1615_v26 }
 0x1e5   :  { %944 = vmatpush1.bf16.msra.mxu1 %v1613_v59 }
 0x1e6   :  { %945 = vmatprep.subr.bf16.mxu1 %v1618_v28 }
 0x1e9   :  { %946 = vmatpush1.bf16.msra.mxu1 %v1616_v29  ;;  %v1677_v29 = vld [vmem:[%s2228_s14 + $0x8] sm:$0xff]  }
 0x1ea   :  { %947 = vmatprep.subr.bf16.mxu1 %v1621_v30 }
 0x1ed   :  { %948 = vmatpush1.bf16.msra.mxu1 %v1619_v31 }
 0x1ee   :  { %949 = vmatprep.subr.bf16.mxu1 %v1624_v32 }
 0x1f1   :  { %950 = vmatpush1.bf16.msra.mxu1 %v1622_v33 }
 0x1f2   :  { %951 = vmatprep.subr.bf16.mxu1 %v1627_v34  ;;  %v1449_v34 = vld [vmem:[%s2229_s11] ss:$0 sm:$0xff] }
 0x1f5   :  { %952 = vmatpush1.bf16.msra.mxu1 %v1625_v35 }
 0x1f6   :  { %953 = vmatprep.subr.bf16.mxu1 %v1630_v36 }
 0x1f9   :  { %954 = vmatpush1.bf16.msra.mxu1 %v1628_v37  ;;  %v1450_v37 = vld [vmem:[%s2230_s12] ss:$0 sm:$0xff] }
 0x1fa   :  { %955 = vmatprep.subr.bf16.mxu1 %v1633_v38  ;;  %v1451_v38 = vld [vmem:[%s2231_s13] ss:$0 sm:$0xff] }
 0x1fd   :  { %956 = vmatpush1.bf16.msra.mxu1 %v1631_v39 }
 0x1fe   :  { %957 = vmatprep.subr.bf16.mxu1 %v1636_v40 }
 0x201   :  { %958 = vmatpush1.bf16.msra.mxu1 %v1634_v41 }
 0x202   :  { %959 = vmatprep.subr.bf16.mxu1 %v1639_v42 }
 0x205   :  { %960 = vmatpush1.bf16.msra.mxu1 %v1637_v43  ;;  %v1336_v43 = vld [vmem:[%s2232_s2] sm:$0x3] }
 0x206   :  { %961 = vmatprep.subr.bf16.mxu1 %v1642_v44  ;;  %v1452_v44 = vld [vmem:[%s2233_s15] ss:$0 sm:$0xff]  ;;  %vm1337_vm9 = vcmp.gt.f32.partialorder %v1336_v43, 0.5 }
 0x209   :  { %962 = vmatpush1.bf16.msra.mxu1 %v1640_v45 }
 0x20a   :  { %963 = vmatprep.subr.bf16.mxu1 %v1645_v46 }
 0x20d   :  { %964 = vmatpush1.bf16.msra.mxu1 %v1643_v47 }
 0x20e   :  { %965 = vmatprep.subr.bf16.mxu1 %v1648_v48 }
 0x211   :  { %966 = vmatpush1.bf16.msra.mxu1 %v1646_v50 }
 0x212   :  { %967 = vmatprep.subr.bf16.mxu1 %v1651_v51 }
 0x215   :  { %968 = vmatpush1.bf16.msra.mxu1 %v1649_v52 }
 0x216   :  { %969 = vmatprep.subr.bf16.mxu1 %v1654_v53 }
 0x219   :  { %970 = vmatpush1.bf16.msra.mxu1 %v1652_v54 }
 0x21a   :  { %971 = vmatprep.subr.bf16.mxu1 %v1657_v55 }
 0x21d   :  { %972 = vmatpush1.bf16.msra.mxu1 %v1655_v56 }
 0x220   :  { %974 = vmatmul.mubr.bf16.vlgmr.msra.gmra.mrb[0].mxu1 %v502_v57 }
 0x22f   :  { %v1102_v4 = vpop.f32.mrb[8].mxu0 }
 0x230   :  { %v1518_v3 = vpop.f32.mrb[9].mxu0 }
 0x231   :  { %v1105_v5 = vpop.f32.mrb[10].mxu0 }
 0x232   :  { %v1519_v7 = vpop.f32.mrb[11].mxu0 }
 0x2f3   :  { %v975_v14 = vpop.f32.mrb[0].mxu1 }
 0x2f4   :  { %v1528_v16 = vadd.f32 %v975_v14, %v573_v10  ;;  %v977_v18 = vpop.f32.mrb[1].mxu1 }
 0x2f5   :  { %v1529_v49 = vadd.f32 %v977_v18, %v577_v12  ;;  %v979_v20 = vpop.f32.mrb[2].mxu1 }
 0x2f6   :  { %v994_v21 = vmul.f32 %v1528_v16, %v987_v13  ;;  %v980_v22 = vpop.f32.mrb[3].mxu1 }
 0x2f7   :  { %v995_v23 = vmul.f32 %v1529_v49, %v991_v15 }
 0x2f8   :  { %v1008_v24 = vadd.f32 %v1001_v17, %v994_v21 }
 0x2f9   :  { %v1009_v25 = vadd.f32 %v1005_v19, %v995_v23 }
 0x2fa   :  { %v1010_v26 = vmax.f32 %v1008_v24, 0.0 }
 0x2fb   :  { %v1011_v27 = vmax.f32 %v1009_v25, 0.0 }
 0x2fc   :  { %v1012_v28 = vpack.c.bf16 %v1010_v26, %v1010_v26 }
 0x2fd   :  { %v1013_v59 = vpack.c.bf16 %v1011_v27, %v1011_v27 }
 0x2ff   :  { %1236 = vmatprep.mubr.bf16.mxu0 %v1013_v59 }
 0x300   :  { %1237 = vmatmul.mubr.bf16.vlgmr.msra.gmra.mrb[12].mxu0 %v1012_v28 }
 0x301   :  { %1524 = vmatprep.mubr.msk.bf16.mxu0 %vm1690_vm6, %v1689_v61  ;;  %1521 = vmatpush3.bf16.msra.mxu0 %v1676_v2 }
 0x302   :  { %1522 = vmatprep.subr.bf16.mxu0 %v1689_v61 }
 0x305   :  { %1523 = vmatpush3.bf16.msra.mxu0 %v1677_v29 }
 0x3d3   :  { %v1503_v30 = vpop.f32.mrb[12].mxu0 }
 0x3d4   :  { %v1504_v31 = vpop.f32.mrb[13].mxu0 }
 0x3d5   :  { %v1505_v32 = vadd.f32 %v1504_v31, %v1503_v30  ;;  %v1506_v33 = vpop.f32.mrb[14].mxu0 }
 0x3d6   :  { %v1507_v35 = vpop.f32.mrb[15].mxu0 }
 0x3d7   :  { %v1239_v36 = vadd.f32 %v1505_v32, %v1102_v4 }
 0x3d9   :  { %v1251_v61 = vadd.f32 %v1449_v34, %v1239_v36 }
 0x3db   :  { %v1259_v39 = vmul.f32 %v1450_v37, %v1251_v61 }
 0x3dd   :  { %v1267_v40 = vadd.f32 %v1451_v38, %v1259_v39 }
 0x3df   :  { %v1268_v41 = vmax.f32 %v1267_v40, 0.0 }
 0x3e1   :  { %v1269_v42 = vpack.c.bf16 %v1268_v41, %v1268_v41 }
 0x3e3   :  { %1525 = vmatmul.mubr.msk.bf16.vlgmr.msra.gmra.mrb[16].mxu0 %vm1064_vm7, %v1269_v42 }
 0x4b6   :  { %v1330_v45 = vpop.f32.mrb[16].mxu0 }
 0x4b7   :  { %v1331_v46 = vadd.f32 %v1452_v44, %v1330_v45  ;;  %v1526_v47 = vpop.f32.mrb[17].mxu0 }
 0x4b8   :  { %v1333_v48 = vpop.f32.mrb[18].mxu0 }
 0x4b9   :  { %v1338_v50 = vsel %vm1337_vm9, -1e-06, %v1331_v46  ;;  %v1527_v51 = vpop.f32.mrb[19].mxu0 }
 0x4ba   :  { %1340 = vst.msk [vmem:[%s2234_s16] sm:$0x3] %vm1339_vm10, %v1338_v50 }

</bundles_post_ra>
